<compile_context>
chip_gen: v5e
topology: v5e:2x2
jax: 0.10.0
libtpu: 0.0.40
codegen_flags: <defaults>
</compile_context>

<pallas_src>
import functools

import jax
import jax.numpy as jnp
from jax.experimental import pallas as pl
from jax.experimental.pallas import tpu as pltpu


LN_EPS = 1e-5  # PyTorch nn.LayerNorm default eps


def _round_up(x, m):
    return ((x + m - 1) // m) * m


def _tams_kernel(idx_ref, table_ref,
                 w1_ref, b1_ref, g1_ref, be1_ref,
                 w2_ref, b2_ref, g2_ref, be2_ref,
                 w3_ref, b3b_ref,
                 out_ref):
    idx = idx_ref[...]                                   # [TB, 1] int32
    tbl = table_ref[...].astype(jnp.float32)             # [n_tasks, E]
    n_tasks = tbl.shape[0]

    # ---- Fused embedding gather: x[r] = table[idx[r]] ----
    # Select-sum over the tiny, VMEM-resident task table (static unroll; the
    # table has only a handful of rows, so this is a few VPU FMAs per tile and
    # avoids any separate XLA gather / [B, E] HBM traffic).
    x = jnp.where(idx == 0, 1.0, 0.0) * tbl[0:1, :]      # [TB, E]
    for t in range(1, n_tasks):
        x = x + jnp.where(idx == t, 1.0, 0.0) * tbl[t:t + 1, :]

    def ln_relu(h, g, b):
        # Single-pass LayerNorm stats: the two reductions are independent so
        # they can overlap in the XLU instead of chaining mean -> mean((h-mu)^2).
        inv_n = 1.0 / h.shape[-1]
        s1 = jnp.sum(h, axis=-1, keepdims=True)
        s2 = jnp.sum(h * h, axis=-1, keepdims=True)
        mu = s1 * inv_n
        var = s2 * inv_n - mu * mu
        h = (h - mu) * jax.lax.rsqrt(var + LN_EPS)
        return jnp.maximum(h * g + b, 0.0)

    # ---- Linear(E -> H) + LayerNorm + ReLU ----
    h = jnp.dot(x, w1_ref[...], preferred_element_type=jnp.float32) + b1_ref[...]
    h = ln_relu(h, g1_ref[...], be1_ref[...])

    # ---- Linear(H -> H) + LayerNorm + ReLU ----
    h = jnp.dot(h, w2_ref[...], preferred_element_type=jnp.float32) + b2_ref[...]
    h = ln_relu(h, g2_ref[...], be2_ref[...])

    # ---- Linear(H -> M) + (b3 + base_importance, pre-folded) + softmax ----
    raw = jnp.dot(h, w3_ref[...], preferred_element_type=jnp.float32) + b3b_ref[...]
    m = jnp.max(raw, axis=-1, keepdims=True)
    e = jnp.exp(raw - m)
    denom = jnp.sum(e, axis=-1, keepdims=True)
    out_ref[...] = (e * pl.reciprocal(denom, approx=True)).astype(out_ref.dtype)


def task_adaptive_modality_selection(task_indices, task_embeddings, params,
                                     *, tile_b=512):
    """task_indices: [B] int32, task_embeddings: [n_tasks, E].

    Returns softmax modality weights [B, n_modalities].
    """
    B = int(task_indices.shape[0])
    n_tasks, E = task_embeddings.shape
    H = params["w1"].shape[1]
    M = params["w3"].shape[1]

    # Batch tile: multiple of 8 (sublane), capped so small batches stay one step.
    TB = _round_up(min(tile_b, _round_up(B, 8)), 8)
    B_pad = _round_up(B, TB)
    grid = (B_pad // TB,)

    idx = task_indices.astype(jnp.int32).reshape(B, 1)
    if B_pad != B:
        idx = jnp.pad(idx, ((0, B_pad - B), (0, 0)))     # padded rows -> task 0

    tiled = lambda shape: pl.BlockSpec(shape, lambda i: (i, 0))
    resident = lambda shape: pl.BlockSpec(shape, lambda i: (0, 0))

    out = pl.pallas_call(
        _tams_kernel,
        out_shape=jax.ShapeDtypeStruct((B_pad, M), jnp.float32),
        grid=grid,
        in_specs=[
            tiled((TB, 1)),                               # task indices
            resident((n_tasks, E)),                       # embedding table
            resident((E, H)), resident((1, H)), resident((1, H)), resident((1, H)),
            resident((H, H)), resident((1, H)), resident((1, H)), resident((1, H)),
            resident((H, M)), resident((1, M)),
        ],
        out_specs=tiled((TB, M)),
        compiler_params=pltpu.CompilerParams(
            dimension_semantics=("parallel",)),
    )(
        idx, task_embeddings,
        params["w1"], params["b1"], params["g1"], params["be1"],
        params["w2"], params["b2"], params["g2"], params["be2"],
        params["w3"], params["b3_base"],
    )
    return out[:B]


def init_params(key, n_modalities=4, n_tasks=3, task_embedding_dim=32,
                hidden_dim=64):
    """Deterministic synthetic parameter init mirroring the nn.Module shapes."""
    ks = jax.random.split(key, 8)
    E, H, M = task_embedding_dim, hidden_dim, n_modalities

    def lin(k, fan_in, shape):
        bound = 1.0 / jnp.sqrt(fan_in)
        return jax.random.uniform(k, shape, jnp.float32, -bound, bound)

    params = {
        # Linear weights stored as [in, out] so the kernel does x @ W.
        "w1": lin(ks[0], E, (E, H)),
        "b1": lin(ks[1], E, (1, H)),
        "g1": jnp.ones((1, H), jnp.float32),
        "be1": jnp.zeros((1, H), jnp.float32),
        "w2": lin(ks[2], H, (H, H)),
        "b2": lin(ks[3], H, (1, H)),
        "g2": jnp.ones((1, H), jnp.float32),
        "be2": jnp.zeros((1, H), jnp.float32),
        "w3": lin(ks[4], H, (H, M)),
        "b3": lin(ks[5], H, (1, M)),
        "base": jnp.ones((1, M), jnp.float32),            # base_importance
    }
    # Fold b3 + base_importance once, host-side (one fewer DMA + VPU add).
    params["b3_base"] = params["b3"] + params["base"]
    task_embeddings = jax.random.normal(
        ks[6], (n_tasks if n_tasks > 1 else 1, E), jnp.float32)
    return params, task_embeddings


def forward(task_embeddings, params, task_indices=None, n_tasks=None,
            *, tile_b=512):
    """Full module forward; the gather is fused inside the Pallas kernel."""
    if n_tasks is None:
        n_tasks = task_embeddings.shape[0]
    if task_indices is None:
        # PyTorch path: expand the (single) embedding row to batch_size=1.
        idx = jnp.zeros((1,), jnp.int32)
    elif n_tasks > 1:
        idx = task_indices.astype(jnp.int32)
    else:
        # n_tasks == 1: every row uses table row 0 (the .expand() branch).
        idx = jnp.zeros((task_indices.shape[0],), jnp.int32)
    return task_adaptive_modality_selection(idx, task_embeddings, params,
                                            tile_b=tile_b)


def _reference(task_embeddings, params, idx):
    """Pure-JAX reference for a sanity check."""
    x = task_embeddings[idx]

    def ln(h, g, b):
        mu = jnp.mean(h, axis=-1, keepdims=True)
        var = jnp.mean((h - mu) ** 2, axis=-1, keepdims=True)
        return (h - mu) / jnp.sqrt(var + LN_EPS) * g + b

    h = jnp.maximum(ln(x @ params["w1"] + params["b1"],
                       params["g1"], params["be1"]), 0.0)
    h = jnp.maximum(ln(h @ params["w2"] + params["b2"],
                       params["g2"], params["be2"]), 0.0)
    raw = h @ params["w3"] + params["b3"] + params["base"]
    return jax.nn.softmax(raw, axis=-1)


if __name__ == "__main__":
    key = jax.random.PRNGKey(0)
    k_param, k_idx = jax.random.split(key)

    n_modalities, n_tasks, E, H = 4, 3, 32, 64
    batch = 20  # exercises tiling + padding with tile_b=8 below

    params, task_embeddings = init_params(
        k_param, n_modalities=n_modalities, n_tasks=n_tasks,
        task_embedding_dim=E, hidden_dim=H)
    task_indices = jax.random.randint(k_idx, (batch,), 0, n_tasks)

    # Small tile to exercise a multi-step batch grid (production default is 512).
    weights = forward(task_embeddings, params, task_indices,
                      n_tasks=n_tasks, tile_b=8)
    weights = jax.block_until_ready(weights)

    ref = _reference(task_embeddings, params, task_indices)
    assert weights.shape == (batch, n_modalities)
    # approx reciprocal (EUP vrcp) -> loosen tolerances vs the exact reference.
    assert jnp.allclose(jnp.sum(weights, axis=-1), 1.0, atol=5e-3)
    assert jnp.allclose(weights, ref, atol=5e-3, rtol=5e-3)

    # task_indices=None path (batch_size=1, table row 0).
    w_none = jax.block_until_ready(forward(task_embeddings, params, None,
                                           n_tasks=n_tasks))
    assert w_none.shape == (1, n_modalities)

    print("KERNEL_OK")
</pallas_src>

<mosaic_0001>
module attributes {stable_mosaic.version = 11 : i64} {
  func.func @_tams_kernel(%arg0: i32, %arg1: memref<8x1xi32, #tpu.memory_space<vmem>>, %arg2: memref<3x32xf32, #tpu.memory_space<vmem>>, %arg3: memref<32x64xf32, #tpu.memory_space<vmem>>, %arg4: memref<1x64xf32, #tpu.memory_space<vmem>>, %arg5: memref<1x64xf32, #tpu.memory_space<vmem>>, %arg6: memref<1x64xf32, #tpu.memory_space<vmem>>, %arg7: memref<64x64xf32, #tpu.memory_space<vmem>>, %arg8: memref<1x64xf32, #tpu.memory_space<vmem>>, %arg9: memref<1x64xf32, #tpu.memory_space<vmem>>, %arg10: memref<1x64xf32, #tpu.memory_space<vmem>>, %arg11: memref<64x4xf32, #tpu.memory_space<vmem>>, %arg12: memref<1x4xf32, #tpu.memory_space<vmem>>, %arg13: memref<8x4xf32, #tpu.memory_space<vmem>>) attributes {dimension_semantics = [#tpu.dimension_semantics<parallel>], iteration_bounds = array<i64: 3>, scalar_prefetch = 0 : i64, scratch_operands = 0 : i64, tpu.core_type = #tpu.core_type<tc>, window_params = [{transform_indices = @transform_0, window_bounds = array<i64: 8, 1>}, {pipeline_mode = #tpu.pipeline_mode<synchronous>, transform_indices = @transform_1, window_bounds = array<i64: 3, 32>}, {pipeline_mode = #tpu.pipeline_mode<synchronous>, transform_indices = @transform_2, window_bounds = array<i64: 32, 64>}, {pipeline_mode = #tpu.pipeline_mode<synchronous>, transform_indices = @transform_3, window_bounds = array<i64: 1, 64>}, {pipeline_mode = #tpu.pipeline_mode<synchronous>, transform_indices = @transform_4, window_bounds = array<i64: 1, 64>}, {pipeline_mode = #tpu.pipeline_mode<synchronous>, transform_indices = @transform_5, window_bounds = array<i64: 1, 64>}, {pipeline_mode = #tpu.pipeline_mode<synchronous>, transform_indices = @transform_6, window_bounds = array<i64: 64, 64>}, {pipeline_mode = #tpu.pipeline_mode<synchronous>, transform_indices = @transform_7, window_bounds = array<i64: 1, 64>}, {pipeline_mode = #tpu.pipeline_mode<synchronous>, transform_indices = @transform_8, window_bounds = array<i64: 1, 64>}, {pipeline_mode = #tpu.pipeline_mode<synchronous>, transform_indices = @transform_9, window_bounds = array<i64: 1, 64>}, {pipeline_mode = #tpu.pipeline_mode<synchronous>, transform_indices = @transform_10, window_bounds = array<i64: 64, 4>}, {pipeline_mode = #tpu.pipeline_mode<synchronous>, transform_indices = @transform_11, window_bounds = array<i64: 1, 4>}, {transform_indices = @transform_12, window_bounds = array<i64: 8, 4>}]} {
    %c0 = arith.constant 0 : index
    %c0_0 = arith.constant 0 : index
    %0 = vector.load %arg1[%c0, %c0_0] : memref<8x1xi32, #tpu.memory_space<vmem>>, vector<8x1xi32>
    %c0_1 = arith.constant 0 : index
    %c0_2 = arith.constant 0 : index
    %1 = vector.load %arg2[%c0_1, %c0_2] : memref<3x32xf32, #tpu.memory_space<vmem>>, vector<3x32xf32>
    %c0_i32 = arith.constant 0 : i32
    %2 = vector.broadcast %c0_i32 : i32 to vector<8x1xi32>
    %3 = arith.cmpi eq, %0, %2 : vector<8x1xi32>
    %cst = arith.constant 1.000000e+00 : f32
    %cst_3 = arith.constant 0.000000e+00 : f32
    %4 = vector.broadcast %cst : f32 to vector<8x1xf32>
    %5 = vector.broadcast %cst_3 : f32 to vector<8x1xf32>
    %6 = arith.select %3, %4, %5 : vector<8x1xi1>, vector<8x1xf32>
    %7 = vector.extract_strided_slice %1 {offsets = [0, 0], sizes = [1, 32], strides = [1, 1]} : vector<3x32xf32> to vector<1x32xf32>
    %8 = vector.broadcast %6 : vector<8x1xf32> to vector<8x32xf32>
    %9 = vector.broadcast %7 : vector<1x32xf32> to vector<8x32xf32>
    %10 = arith.mulf %8, %9 : vector<8x32xf32>
    %c1_i32 = arith.constant 1 : i32
    %11 = vector.broadcast %c1_i32 : i32 to vector<8x1xi32>
    %12 = arith.cmpi eq, %0, %11 : vector<8x1xi32>
    %cst_4 = arith.constant 1.000000e+00 : f32
    %cst_5 = arith.constant 0.000000e+00 : f32
    %13 = vector.broadcast %cst_4 : f32 to vector<8x1xf32>
    %14 = vector.broadcast %cst_5 : f32 to vector<8x1xf32>
    %15 = arith.select %12, %13, %14 : vector<8x1xi1>, vector<8x1xf32>
    %16 = vector.extract_strided_slice %1 {offsets = [1, 0], sizes = [1, 32], strides = [1, 1]} : vector<3x32xf32> to vector<1x32xf32>
    %17 = vector.broadcast %15 : vector<8x1xf32> to vector<8x32xf32>
    %18 = vector.broadcast %16 : vector<1x32xf32> to vector<8x32xf32>
    %19 = arith.mulf %17, %18 : vector<8x32xf32>
    %20 = arith.addf %10, %19 : vector<8x32xf32>
    %c2_i32 = arith.constant 2 : i32
    %21 = vector.broadcast %c2_i32 : i32 to vector<8x1xi32>
    %22 = arith.cmpi eq, %0, %21 : vector<8x1xi32>
    %cst_6 = arith.constant 1.000000e+00 : f32
    %cst_7 = arith.constant 0.000000e+00 : f32
    %23 = vector.broadcast %cst_6 : f32 to vector<8x1xf32>
    %24 = vector.broadcast %cst_7 : f32 to vector<8x1xf32>
    %25 = arith.select %22, %23, %24 : vector<8x1xi1>, vector<8x1xf32>
    %26 = vector.extract_strided_slice %1 {offsets = [2, 0], sizes = [1, 32], strides = [1, 1]} : vector<3x32xf32> to vector<1x32xf32>
    %27 = vector.broadcast %25 : vector<8x1xf32> to vector<8x32xf32>
    %28 = vector.broadcast %26 : vector<1x32xf32> to vector<8x32xf32>
    %29 = arith.mulf %27, %28 : vector<8x32xf32>
    %30 = arith.addf %20, %29 : vector<8x32xf32>
    %c0_8 = arith.constant 0 : index
    %c0_9 = arith.constant 0 : index
    %31 = vector.load %arg3[%c0_8, %c0_9] : memref<32x64xf32, #tpu.memory_space<vmem>>, vector<32x64xf32>
    %cst_10 = arith.constant dense<0.000000e+00> : vector<8x64xf32>
    %32 = tpu.matmul %30, %31, %cst_10 {dimension_numbers = #tpu.dot_dimension_numbers<[1], [0], [0], [1], [0, 0, 1, 1], [], []>} : vector<8x32xf32>, vector<32x64xf32>, vector<8x64xf32> -> vector<8x64xf32>
    %c0_11 = arith.constant 0 : index
    %c0_12 = arith.constant 0 : index
    %33 = vector.load %arg4[%c0_11, %c0_12] : memref<1x64xf32, #tpu.memory_space<vmem>>, vector<1x64xf32>
    %34 = vector.broadcast %33 : vector<1x64xf32> to vector<8x64xf32>
    %35 = arith.addf %32, %34 : vector<8x64xf32>
    %c0_13 = arith.constant 0 : index
    %c0_14 = arith.constant 0 : index
    %36 = vector.load %arg5[%c0_13, %c0_14] : memref<1x64xf32, #tpu.memory_space<vmem>>, vector<1x64xf32>
    %c0_15 = arith.constant 0 : index
    %c0_16 = arith.constant 0 : index
    %37 = vector.load %arg6[%c0_15, %c0_16] : memref<1x64xf32, #tpu.memory_space<vmem>>, vector<1x64xf32>
    %cst_17 = arith.constant dense<0.000000e+00> : vector<8xf32>
    %38 = vector.multi_reduction <add>, %35, %cst_17 [1] : vector<8x64xf32> to vector<8xf32>
    %39 = vector.shape_cast %38 : vector<8xf32> to vector<8x1xf32>
    %40 = arith.mulf %35, %35 : vector<8x64xf32>
    %cst_18 = arith.constant dense<0.000000e+00> : vector<8xf32>
    %41 = vector.multi_reduction <add>, %40, %cst_18 [1] : vector<8x64xf32> to vector<8xf32>
    %42 = vector.shape_cast %41 : vector<8xf32> to vector<8x1xf32>
    %cst_19 = arith.constant 1.562500e-02 : f32
    %43 = vector.broadcast %cst_19 : f32 to vector<8x1xf32>
    %44 = arith.mulf %39, %43 : vector<8x1xf32>
    %cst_20 = arith.constant 1.562500e-02 : f32
    %45 = vector.broadcast %cst_20 : f32 to vector<8x1xf32>
    %46 = arith.mulf %42, %45 : vector<8x1xf32>
    %47 = arith.mulf %44, %44 : vector<8x1xf32>
    %48 = arith.subf %46, %47 : vector<8x1xf32>
    %49 = vector.broadcast %44 : vector<8x1xf32> to vector<8x64xf32>
    %50 = arith.subf %35, %49 : vector<8x64xf32>
    %cst_21 = arith.constant 9.99999974E-6 : f32
    %51 = vector.broadcast %cst_21 : f32 to vector<8x1xf32>
    %52 = arith.addf %48, %51 : vector<8x1xf32>
    %53 = math.rsqrt %52 : vector<8x1xf32>
    %54 = vector.broadcast %53 : vector<8x1xf32> to vector<8x64xf32>
    %55 = arith.mulf %50, %54 : vector<8x64xf32>
    %56 = vector.broadcast %36 : vector<1x64xf32> to vector<8x64xf32>
    %57 = arith.mulf %55, %56 : vector<8x64xf32>
    %58 = vector.broadcast %37 : vector<1x64xf32> to vector<8x64xf32>
    %59 = arith.addf %57, %58 : vector<8x64xf32>
    %cst_22 = arith.constant 0.000000e+00 : f32
    %60 = vector.broadcast %cst_22 : f32 to vector<8x64xf32>
    %61 = arith.maximumf %59, %60 : vector<8x64xf32>
    %c0_23 = arith.constant 0 : index
    %c0_24 = arith.constant 0 : index
    %62 = vector.load %arg7[%c0_23, %c0_24] : memref<64x64xf32, #tpu.memory_space<vmem>>, vector<64x64xf32>
    %cst_25 = arith.constant dense<0.000000e+00> : vector<8x64xf32>
    %63 = tpu.matmul %61, %62, %cst_25 {dimension_numbers = #tpu.dot_dimension_numbers<[1], [0], [0], [1], [0, 0, 1, 1], [], []>} : vector<8x64xf32>, vector<64x64xf32>, vector<8x64xf32> -> vector<8x64xf32>
    %c0_26 = arith.constant 0 : index
    %c0_27 = arith.constant 0 : index
    %64 = vector.load %arg8[%c0_26, %c0_27] : memref<1x64xf32, #tpu.memory_space<vmem>>, vector<1x64xf32>
    %65 = vector.broadcast %64 : vector<1x64xf32> to vector<8x64xf32>
    %66 = arith.addf %63, %65 : vector<8x64xf32>
    %c0_28 = arith.constant 0 : index
    %c0_29 = arith.constant 0 : index
    %67 = vector.load %arg9[%c0_28, %c0_29] : memref<1x64xf32, #tpu.memory_space<vmem>>, vector<1x64xf32>
    %c0_30 = arith.constant 0 : index
    %c0_31 = arith.constant 0 : index
    %68 = vector.load %arg10[%c0_30, %c0_31] : memref<1x64xf32, #tpu.memory_space<vmem>>, vector<1x64xf32>
    %cst_32 = arith.constant dense<0.000000e+00> : vector<8xf32>
    %69 = vector.multi_reduction <add>, %66, %cst_32 [1] : vector<8x64xf32> to vector<8xf32>
    %70 = vector.shape_cast %69 : vector<8xf32> to vector<8x1xf32>
    %71 = arith.mulf %66, %66 : vector<8x64xf32>
    %cst_33 = arith.constant dense<0.000000e+00> : vector<8xf32>
    %72 = vector.multi_reduction <add>, %71, %cst_33 [1] : vector<8x64xf32> to vector<8xf32>
    %73 = vector.shape_cast %72 : vector<8xf32> to vector<8x1xf32>
    %cst_34 = arith.constant 1.562500e-02 : f32
    %74 = vector.broadcast %cst_34 : f32 to vector<8x1xf32>
    %75 = arith.mulf %70, %74 : vector<8x1xf32>
    %cst_35 = arith.constant 1.562500e-02 : f32
    %76 = vector.broadcast %cst_35 : f32 to vector<8x1xf32>
    %77 = arith.mulf %73, %76 : vector<8x1xf32>
    %78 = arith.mulf %75, %75 : vector<8x1xf32>
    %79 = arith.subf %77, %78 : vector<8x1xf32>
    %80 = vector.broadcast %75 : vector<8x1xf32> to vector<8x64xf32>
    %81 = arith.subf %66, %80 : vector<8x64xf32>
    %cst_36 = arith.constant 9.99999974E-6 : f32
    %82 = vector.broadcast %cst_36 : f32 to vector<8x1xf32>
    %83 = arith.addf %79, %82 : vector<8x1xf32>
    %84 = math.rsqrt %83 : vector<8x1xf32>
    %85 = vector.broadcast %84 : vector<8x1xf32> to vector<8x64xf32>
    %86 = arith.mulf %81, %85 : vector<8x64xf32>
    %87 = vector.broadcast %67 : vector<1x64xf32> to vector<8x64xf32>
    %88 = arith.mulf %86, %87 : vector<8x64xf32>
    %89 = vector.broadcast %68 : vector<1x64xf32> to vector<8x64xf32>
    %90 = arith.addf %88, %89 : vector<8x64xf32>
    %cst_37 = arith.constant 0.000000e+00 : f32
    %91 = vector.broadcast %cst_37 : f32 to vector<8x64xf32>
    %92 = arith.maximumf %90, %91 : vector<8x64xf32>
    %c0_38 = arith.constant 0 : index
    %c0_39 = arith.constant 0 : index
    %93 = vector.load %arg11[%c0_38, %c0_39] : memref<64x4xf32, #tpu.memory_space<vmem>>, vector<64x4xf32>
    %cst_40 = arith.constant dense<0.000000e+00> : vector<8x4xf32>
    %94 = tpu.matmul %92, %93, %cst_40 {dimension_numbers = #tpu.dot_dimension_numbers<[1], [0], [0], [1], [0, 0, 1, 1], [], []>} : vector<8x64xf32>, vector<64x4xf32>, vector<8x4xf32> -> vector<8x4xf32>
    %c0_41 = arith.constant 0 : index
    %c0_42 = arith.constant 0 : index
    %95 = vector.load %arg12[%c0_41, %c0_42] : memref<1x4xf32, #tpu.memory_space<vmem>>, vector<1x4xf32>
    %96 = vector.broadcast %95 : vector<1x4xf32> to vector<8x4xf32>
    %97 = arith.addf %94, %96 : vector<8x4xf32>
    %cst_43 = arith.constant dense<0xFF800000> : vector<8xf32>
    %98 = vector.multi_reduction <maximumf>, %97, %cst_43 [1] : vector<8x4xf32> to vector<8xf32>
    %99 = vector.shape_cast %98 : vector<8xf32> to vector<8x1xf32>
    %100 = vector.broadcast %99 : vector<8x1xf32> to vector<8x4xf32>
    %101 = arith.subf %97, %100 : vector<8x4xf32>
    %102 = math.exp %101 : vector<8x4xf32>
    %cst_44 = arith.constant dense<0.000000e+00> : vector<8xf32>
    %103 = vector.multi_reduction <add>, %102, %cst_44 [1] : vector<8x4xf32> to vector<8xf32>
    %104 = vector.shape_cast %103 : vector<8xf32> to vector<8x1xf32>
    %105 = tpu.reciprocal %104 {approx = true} : vector<8x1xf32> -> vector<8x1xf32>
    %106 = vector.broadcast %105 : vector<8x1xf32> to vector<8x4xf32>
    %107 = arith.mulf %102, %106 : vector<8x4xf32>
    %c0_45 = arith.constant 0 : index
    %c0_46 = arith.constant 0 : index
    %108 = vector.load %arg13[%c0_45, %c0_46] : memref<8x4xf32, #tpu.memory_space<vmem>>, vector<8x4xf32>
    tpu.vector_store %arg13[%c0_45, %c0_46], %107 {strides = array<i32>} : memref<8x4xf32, #tpu.memory_space<vmem>>, vector<8x4xf32>,
    return
  }
  func.func @transform_0(%arg0: i32) -> (i32, i32) {
    %c0_i32 = arith.constant 0 : i32
    %c0_i32_0 = arith.constant 0 : i32
    return %arg0, %c0_i32 : i32, i32
  }
  func.func @transform_1(%arg0: i32) -> (i32, i32) {
    %c0_i32 = arith.constant 0 : i32
    %c0_i32_0 = arith.constant 0 : i32
    %c0_i32_1 = arith.constant 0 : i32
    return %c0_i32, %c0_i32_0 : i32, i32
  }
  func.func @transform_2(%arg0: i32) -> (i32, i32) {
    %c0_i32 = arith.constant 0 : i32
    %c0_i32_0 = arith.constant 0 : i32
    %c0_i32_1 = arith.constant 0 : i32
    return %c0_i32, %c0_i32_0 : i32, i32
  }
  func.func @transform_3(%arg0: i32) -> (i32, i32) {
    %c0_i32 = arith.constant 0 : i32
    %c0_i32_0 = arith.constant 0 : i32
    %c0_i32_1 = arith.constant 0 : i32
    return %c0_i32, %c0_i32_0 : i32, i32
  }
  func.func @transform_4(%arg0: i32) -> (i32, i32) {
    %c0_i32 = arith.constant 0 : i32
    %c0_i32_0 = arith.constant 0 : i32
    %c0_i32_1 = arith.constant 0 : i32
    return %c0_i32, %c0_i32_0 : i32, i32
  }
  func.func @transform_5(%arg0: i32) -> (i32, i32) {
    %c0_i32 = arith.constant 0 : i32
    %c0_i32_0 = arith.constant 0 : i32
    %c0_i32_1 = arith.constant 0 : i32
    return %c0_i32, %c0_i32_0 : i32, i32
  }
  func.func @transform_6(%arg0: i32) -> (i32, i32) {
    %c0_i32 = arith.constant 0 : i32
    %c0_i32_0 = arith.constant 0 : i32
    %c0_i32_1 = arith.constant 0 : i32
    return %c0_i32, %c0_i32_0 : i32, i32
  }
  func.func @transform_7(%arg0: i32) -> (i32, i32) {
    %c0_i32 = arith.constant 0 : i32
    %c0_i32_0 = arith.constant 0 : i32
    %c0_i32_1 = arith.constant 0 : i32
    return %c0_i32, %c0_i32_0 : i32, i32
  }
  func.func @transform_8(%arg0: i32) -> (i32, i32) {
    %c0_i32 = arith.constant 0 : i32
    %c0_i32_0 = arith.constant 0 : i32
    %c0_i32_1 = arith.constant 0 : i32
    return %c0_i32, %c0_i32_0 : i32, i32
  }
  func.func @transform_9(%arg0: i32) -> (i32, i32) {
    %c0_i32 = arith.constant 0 : i32
    %c0_i32_0 = arith.constant 0 : i32
    %c0_i32_1 = arith.constant 0 : i32
    return %c0_i32, %c0_i32_0 : i32, i32
  }
  func.func @transform_10(%arg0: i32) -> (i32, i32) {
    %c0_i32 = arith.constant 0 : i32
    %c0_i32_0 = arith.constant 0 : i32
    %c0_i32_1 = arith.constant 0 : i32
    return %c0_i32, %c0_i32_0 : i32, i32
  }
  func.func @transform_11(%arg0: i32) -> (i32, i32) {
    %c0_i32 = arith.constant 0 : i32
    %c0_i32_0 = arith.constant 0 : i32
    %c0_i32_1 = arith.constant 0 : i32
    return %c0_i32, %c0_i32_0 : i32, i32
  }
  func.func @transform_12(%arg0: i32) -> (i32, i32) {
    %c0_i32 = arith.constant 0 : i32
    %c0_i32_0 = arith.constant 0 : i32
    return %arg0, %c0_i32 : i32, i32
  }
}

</mosaic_0001>

<bundles_post_ra>
// kernel: tpu_custom_call.1
= control target key start
LH: loop header
LB: loop body
LE: loop exit
PB: predicated region body
PF: predicated region fallthrough
CT: control target
= control target key end

     0   :  { %17 = vsyncpa [#allocation3], 0  ;;  %s878_s21 = smov 0   ;;  %s986_s0 = inlined_call_operand.vmem [shape: s32[24,1], index: 0, kind: input, shape index: {}]   ;;  %s987_s1 = inlined_call_operand.vmem [shape: f32[3,32], index: 1, kind: input, shape index: {}]   ;;  %s988_s2 = inlined_call_operand.hbm [shape: f32[32,64], index: 2, kind: input, shape index: {}]   ;;  %s989_s3 = inlined_call_operand.vmem [shape: f32[1,64], index: 3, kind: input, shape index: {}]   ;;  %s990_s4 = inlined_call_operand.vmem [shape: f32[1,64], index: 4, kind: input, shape index: {}]   ;;  %s991_s5 = inlined_call_operand.vmem [shape: f32[1,64], index: 5, kind: input, shape index: {}]   ;;  %s992_s6 = inlined_call_operand.vmem [shape: f32[64,64], index: 6, kind: input, shape index: {}]   ;;  %s993_s7 = inlined_call_operand.vmem [shape: f32[1,64], index: 7, kind: input, shape index: {}]   ;;  %s994_s8 = inlined_call_operand.vmem [shape: f32[1,64], index: 8, kind: input, shape index: {}]   ;;  %s995_s9 = inlined_call_operand.vmem [shape: f32[1,64], index: 9, kind: input, shape index: {}]   ;;  %s996_s10 = inlined_call_operand.vmem [shape: f32[64,4], index: 10, kind: input, shape index: {}]   ;;  %s997_s11 = inlined_call_operand.vmem [shape: f32[1,4], index: 11, kind: input, shape index: {}]   ;;  %s998_s12 = inlined_call_operand.vmem [shape: f32[24,4], index: 12, kind: output, shape index: {}]  }
   0x1 LB: > { %s325_s24 = sshll.u32 %s988_s2, 4  ;;  %s708_s25 = sadd.s32 4294967295, %s806_s21   ;;  %s806_s21 = sphi %s878_s21, %s23_s21   ;;  %s326_s24 = int_to_ptr.hbm [resolvable:$true] %s325_s24 }
   0x2   : > { %p710_p0 = scmp.ge.s32.totalorder %s806_s21, 1  ;;  %p311_p1 = scmp.lt.s32.totalorder %s806_s21, 4 }
   0x3   : > { %p730_p2 = scmp.eq.s32.totalorder %s708_s25, 0  ;;  %s808_s26 = smov [#allocation2]  }
   0x4   : > { %p312_p3 = pnand %p710_p0, %p311_p1  ;;  %s327_s27 = sshll.u32 %s808_s26, 4  ;;  %s328_s27 = int_to_ptr.vmem [resolvable:$true] %s327_s27 }
   0x5   : > { %s809_s28 = smov 128   ;;  %s810_s29 = smov 8  }
   0x6   : > { %p726_p4 = pneg %p312_p3  ;;  %377 = sbr.rel (%p312_p3) target bundleno = 1108 (0x454), region = 68 }
   0x8   : > { %p727_p5 = pnand %p730_p2, %p726_p4 }
   0xa   : > { %729 = dma.hbm_to_vmem [thread:$0]  (!%p727_p5), %s326_s24, 512, %s328_s27, [#allocation3], %s809_s28, %s809_s28, %s810_s29  }
   0xb   : > { %801 = dma.done.wait (%p730_p2), [#allocation3], 512  }
   0xc   : > { %803 = vsyncadd (%p730_p2), [#allocation3], 4294966784  ;;  %p418_p6 = scmp.lt.s32.totalorder %s708_s25, 2  ;;  %v811_v0 = vmov 0   ;;  %v812_v2 = vmov 0.0   ;;  %v460_v7 = vld [vmem:[#allocation2 + $0x18] sm:$0xff] }
   0xd   : > { %745 = vset.pattern.permute.xlu0 %v811_v0  ;;  %v459_v8 = vld [vmem:[#allocation2 + $0x10] sm:$0xff]  ;;  %481 = vmatpush.msra.mxu0 %v460_v7  ;;  %v458_v9 = vld [vmem:[#allocation2 + $0x8] sm:$0xff]  ;;  %v457_v10 = vld [vmem:[#allocation2] sm:$0xff]  ;;  %vm465_vm3 = vcmask 261120   ;;  %vm491_vm4 = vcmask 523264   ;;  %vm630_vm11 = vcmask 31744  }
   0xe   : > { %s1000_s25 = smov (!%p418_p6, %s708_s25), 2  ;;  %v427_v11 = vld [vmem:[%s987_s1] sm:$0x7]  ;;  %v532_v30 = vld [vmem:[%s992_s6 + $0x38] sm:$0xff]  ;;  %v531_v31 = vld [vmem:[%s992_s6 + $0x30] sm:$0xff] }
   0xf   : > { %s715_s30 = sshll.u32 %s1000_s25, 3  ;;  %482 = vmatpush.msra.mxu0 %v459_v8  ;;  %v435_v13 = vperm.slane %v427_v11, 0  ;;  %v444_v14 = vperm.slane %v427_v11, 1  ;;  %v454_v19 = vperm.slane %v427_v11, 2  ;;  %v751_v24 = vld [vmem:[%s989_s3] ss:$0 sm:$0xff]  ;;  %548 = vmatpush.msra.mxu1 %v532_v30 }
  0x10   : > { %s421_s15 = scalar_lea.vmem %s986_s0, %s715_s30  ;;  %v530_v32 = vld [vmem:[%s992_s6 + $0x28] sm:$0xff]  ;;  %v529_v33 = vld [vmem:[%s992_s6 + $0x20] sm:$0xff]  ;;  %v528_v34 = vld [vmem:[%s992_s6 + $0x18] sm:$0xff]  ;;  %s425_s22 = scalar_lea.vmem %s998_s12, %s715_s30 }
  0x11   : > { %v426_v1 = vld [vmem:[%s421_s15] sm:$0xff]  ;;  %483 = vmatpush.msra.mxu0 %v458_v9  ;;  %549 = vmatpush.msra.mxu1 %v531_v31  ;;  %v527_v36 = vld [vmem:[%s992_s6 + $0x10] sm:$0xff]  ;;  %v526_v37 = vld [vmem:[%s992_s6 + $0x8] sm:$0xff] }
  0x12   : > { %vm428_vm0 = vcmp.eq.s32.totalorder %v426_v1, 0  ;;  %vm437_vm1 = vcmp.eq.s32.totalorder %v426_v1, 1  ;;  %vm447_vm2 = vcmp.eq.s32.totalorder %v426_v1, 2  ;;  %v525_v39 = vld [vmem:[%s992_s6] sm:$0xff]  ;;  %v602_v1 = vld [vmem:[%s996_s10 + $0x38] sm:$0xff]  ;;  %v597_v7 = vld [vmem:[%s996_s10 + $0x10] sm:$0xff] }
  0x13   : > { %v429_v3 = vsel %vm428_vm0, 1.0, %v812_v2  ;;  %v438_v4 = vsel %vm437_vm1, 1.0, %v812_v2  ;;  %v448_v6 = vsel %vm447_vm2, 1.0, %v812_v2  ;;  %484 = vmatpush.msra.mxu0 %v457_v10  ;;  %550 = vmatpush.msra.mxu1 %v530_v32  ;;  %v752_v52 = vld [vmem:[%s990_s4] ss:$0 sm:$0xff]  ;;  %v601_v2 = vld [vmem:[%s996_s10 + $0x30] sm:$0xff] }
  0x14   : > { %v746_v5 = vpack.i.bf16 %v438_v4, %v429_v3  ;;  %v753_v55 = vld [vmem:[%s991_s5] ss:$0 sm:$0xff]  ;;  %618 = vmatpush.msra.mxu2 %v602_v1  ;;  %v600_v3 = vld [vmem:[%s996_s10 + $0x28] sm:$0xff] }
  0x15   : > { %551 = vmatpush.msra.mxu1 %v529_v33  ;;  %v754_v59 = vld [vmem:[%s993_s7] ss:$0 sm:$0xff]  ;;  %v596_v8 = vld [vmem:[%s996_s10 + $0x8] sm:$0xff] }
  0x16   : > { %747 = vperm.xlu0 %745, %v746_v5   ;;  %619 = vmatpush.msra.mxu2 %v601_v2  ;;  %v599_v4 = vld [vmem:[%s996_s10 + $0x20] sm:$0xff]  ;;  %v598_v5 = vld [vmem:[%s996_s10 + $0x18] sm:$0xff] }
  0x17   : > { %552 = vmatpush.msra.mxu1 %v528_v34  ;;  %v595_v10 = vld [vmem:[%s996_s10] sm:$0xff] }
  0x18   : > { %620 = vmatpush.msra.mxu2 %v600_v3  ;;  %v757_v30 = vld [vmem:[%s997_s11] ss:$0 sm:$0xff] }
  0x19   : > { %553 = vmatpush.msra.mxu1 %v527_v36 }
  0x1a   : > { %621 = vmatpush.msra.mxu2 %v599_v4 }
  0x1b   : > { %554 = vmatpush.msra.mxu1 %v526_v37 }
  0x1c   : > { %622 = vmatpush.msra.mxu2 %v598_v5 }
  0x1d   : > { %555 = vmatpush.msra.mxu1 %v525_v39 }
  0x1e   : > { %451 = vperm.xlu0 %745, %v448_v6   ;;  %623 = vmatpush.msra.mxu2 %v597_v7 }
  0x20   : > { %624 = vmatpush.msra.mxu2 %v596_v8 }
  0x22   : > { %625 = vmatpush.msra.mxu2 %v595_v10 }
  0x88   : > { %v748_v12 = vpop.permute.xlu0 %747 }
  0x89   : > { %v750_v15 = vunpack.i.h.bf16 %v748_v12  ;;  %v749_v16 = vunpack.i.l.bf16 %v748_v12 }
  0x8b   : > { %v445_v17 = vmul.f32 %v750_v15, %v444_v14  ;;  %v436_v18 = vmul.f32 %v749_v16, %v435_v13 }
  0x8d   : > { %v446_v21 = vadd.f32 %v445_v17, %v436_v18 }
  0x90   : > { %v452_v20 = vpop.permute.xlu0 %451 }
  0x91   : > { %v455_v22 = vmul.f32 %v454_v19, %v452_v20 }
  0x93   : > { %v456_v23 = vadd.f32 %v455_v22, %v446_v21 }
  0x95   : > { %717 = vmatmul.msk.f32.vlgmr.msra.gmra.mxu0 %vm465_vm3, %v456_v23  ;;  %v755_v23 = vld [vmem:[%s994_s8] ss:$0 sm:$0xff] }
 0x112   : > { %v486_v25 = vpop.f32.mrf.mxu0 }
 0x113   : > { %v487_v26 = vadd.f32 %v751_v24, %v486_v25 }
 0x115   : > { %v492_v27 = vsel %vm491_vm4, %v487_v26, 0.0  ;;  %v495_v28 = vmul.f32 %v487_v26, %v487_v26 }
 0x116   : > { %493 = vadd.xlane.f32.xlu1 %v492_v27 }
 0x117   : > { %v496_v29 = vsel %vm491_vm4, %v495_v28, 0.0 }
 0x11e   : > { %497 = vadd.xlane.f32.xlu1 %v496_v29 }
 0x189   : > { %v494_v35 = vpop.xlane.xlu1 %493 }
 0x18a   : > { %v499_v38 = vmul.f32 0.015625, %v494_v35 }
 0x18c   : > { %v501_v41 = vmul.f32 %v499_v38, %v499_v38  ;;  %v503_v51 = vsub.f32 %v487_v26, %v499_v38  ;;  %v756_v26 = vld [vmem:[%s995_s9] ss:$0 sm:$0xff] }
 0x191   : > { %v498_v40 = vpop.xlane.xlu1 %497 }
 0x192   : > { %v500_v42 = vmul.f32 0.015625, %v498_v40 }
 0x194   : > { %v502_v43 = vsub.f32 %v500_v42, %v501_v41 }
 0x196   : > { %v504_v44 = vadd.f32 1e-05, %v502_v43 }
 0x198   : > { %758 = vrsqrt.f32 %v504_v44  ;;  %vm511_vm6 = vweird.f32 %v504_v44 }
 0x19e   : > { %v759_v45 = vpop.eup %758 }
 0x19f   : > { %v506_v46 = vmul.f32 %v759_v45, %v504_v44  ;;  %vm512_vm5 = vweird.f32 %v759_v45 }
 0x1a0   : > { %vm513_vm7 = vmor %vm511_vm6, %vm512_vm5 }
 0x1a1   : > { %v507_v47 = vmul.f32 %v759_v45, %v506_v46 }
 0x1a3   : > { %v508_v48 = vmul.f32 0.5, %v507_v47 }
 0x1a5   : > { %v509_v49 = vsub.f32 1.5, %v508_v48 }
 0x1a7   : > { %v510_v50 = vmul.f32 %v759_v45, %v509_v49 }
 0x1a9   : > { %v514_v53 = vsel %vm513_vm7, %v759_v45, %v510_v50 }
 0x1aa   : > { %v515_v54 = vmul.f32 %v514_v53, %v503_v51 }
 0x1ac   : > { %v519_v56 = vmul.f32 %v752_v52, %v515_v54 }
 0x1ae   : > { %v523_v57 = vadd.f32 %v753_v55, %v519_v56 }
 0x1b0   : > { %v524_v58 = vmax.f32 %v523_v57, 0.0 }
 0x1b2   : > { %718 = vmatmul.msk.f32.vlgmr.msra.gmra.mxu1 %vm491_vm4, %v524_v58 }
 0x22f   : > { %v557_v60 = vpop.f32.mrf.mxu1 }
 0x230   : > { %v558_v61 = vadd.f32 %v754_v59, %v557_v60 }
 0x232   : > { %v562_v62 = vsel %vm491_vm4, %v558_v61, 0.0  ;;  %v565_v63 = vmul.f32 %v558_v61, %v558_v61 }
 0x233   : > { %563 = vadd.xlane.f32.xlu2 %v562_v62 }
 0x234   : > { %v566_v0 = vsel %vm491_vm4, %v565_v63, 0.0 }
 0x23b   : > { %567 = vadd.xlane.f32.xlu2 %v566_v0 }
 0x2a6   : > { %v564_v6 = vpop.xlane.xlu2 %563 }
 0x2a7   : > { %v569_v9 = vmul.f32 0.015625, %v564_v6 }
 0x2a9   : > { %v571_v12 = vmul.f32 %v569_v9, %v569_v9  ;;  %v573_v22 = vsub.f32 %v558_v61, %v569_v9 }
 0x2ae   : > { %v568_v11 = vpop.xlane.xlu2 %567 }
 0x2af   : > { %v570_v13 = vmul.f32 0.015625, %v568_v11 }
 0x2b1   : > { %v572_v14 = vsub.f32 %v570_v13, %v571_v12 }
 0x2b3   : > { %v574_v15 = vadd.f32 1e-05, %v572_v14 }
 0x2b5   : > { %760 = vrsqrt.f32 %v574_v15  ;;  %vm581_vm9 = vweird.f32 %v574_v15 }
 0x2bb   : > { %v761_v16 = vpop.eup %760 }
 0x2bc   : > { %v576_v17 = vmul.f32 %v761_v16, %v574_v15  ;;  %vm582_vm8 = vweird.f32 %v761_v16 }
 0x2bd   : > { %vm583_vm10 = vmor %vm581_vm9, %vm582_vm8 }
 0x2be   : > { %v577_v18 = vmul.f32 %v761_v16, %v576_v17 }
 0x2c0   : > { %v578_v19 = vmul.f32 0.5, %v577_v18 }
 0x2c2   : > { %v579_v20 = vsub.f32 1.5, %v578_v19 }
 0x2c4   : > { %v580_v21 = vmul.f32 %v761_v16, %v579_v20 }
 0x2c6   : > { %v584_v24 = vsel %vm583_vm10, %v761_v16, %v580_v21 }
 0x2c7   : > { %v585_v25 = vmul.f32 %v584_v24, %v573_v22 }
 0x2c9   : > { %v589_v27 = vmul.f32 %v755_v23, %v585_v25 }
 0x2cb   : > { %v593_v28 = vadd.f32 %v756_v26, %v589_v27 }
 0x2cd   : > { %v594_v29 = vmax.f32 %v593_v28, 0.0 }
 0x2cf   : > { %719 = vmatmul.msk.f32.vlgmr.msra.gmra.mxu2 %vm491_vm4, %v594_v29 }
 0x352   : > { %v627_v31 = vpop.f32.mrf.mxu2 }
 0x353   : > { %v628_v32 = vadd.f32 %v757_v30, %v627_v31 }
 0x355   : > { %v631_v33 = vsel %vm630_vm11, %v628_v32, -inf }
 0x356   : > { %632 = vmax.xlane.f32.xlu0 %v631_v33 }
 0x3c9   : > { %v633_v34 = vpop.xlane.xlu0 %632 }
 0x3ca   : > { %v634_v35 = vsub.f32 %v628_v32, %v633_v34 }
 0x3cc   : > { %v635_v36 = vmul.f32 1.442695, %v634_v35 }
 0x3ce   : > { %762 = vpow2.f32 %v635_v36 }
 0x3d4   : > { %v763_v37 = vpop.eup %762 }
 0x3d5   : > { %v637_v38 = vsel %vm630_vm11, %v763_v37, 0.0 }
 0x3d6   : > { %638 = vadd.xlane.f32.xlu1 %v637_v38 }
 0x449   : > { %v639_v39 = vpop.xlane.xlu1 %638 }
 0x44a   : > { %764 = vrcp.f32 %v639_v39 }
 0x450   : > { %v765_v40 = vpop.eup %764 }
 0x451   : > { %v641_v41 = vmul.f32 %v765_v40, %v763_v37 }
 0x453   : > { %642 = vst.msk [vmem:[%s425_s22] sm:$0xff] %vm630_vm11, %v641_v41 }
 0x454 PF: > { %s23_s21 = sadd.s32 1, %s806_s21  }
 0x455   : > { %p20_p7 = scmp.ge.s32.totalorder %s23_s21, 5  }
 0x457   :  { %22 = sbr.rel (!%p20_p7) target bundleno = 1 (0x1), region = 103 }
 0x45c   :  { %662 = vsyncpa [#allocation3], 1 }
 0x45d   :  { %664 = vsyncpa [#allocation3 + $0x1], 1 }

</bundles_post_ra>
